<compile_context>
chip_gen: v6e
topology: v6e:2x2x1
jax: 0.10.0
libtpu: 0.0.40
codegen_flags: <defaults>
</compile_context>

<pallas_src>
import jax
import jax.numpy as jnp
from jax import lax
from jax.experimental import pallas as pl
from jax.experimental.pallas import tpu as pltpu


def _model_kernel(t1_ref, t2_ref, t3_ref, w1_ref, w2_ref, out_ref):
    t1 = t1_ref[...]          # (1, H)
    t2 = t2_ref[...]          # (H, H)
    t3 = t3_ref[...]          # (B, H, H)
    w1 = w1_ref[...]          # (H, H) torch layout (out_features, in_features)
    w2 = w2_ref[...]          # (H, H)

    f32 = jnp.float32

    # ---- rank-1 reductions, O(H^2) VPU/XLU work (no O(H^3) matmuls) -------
    s1 = jnp.sum(w1, axis=0, keepdims=True)       # (1,H)  s1[m] = sum_j w1[j,m]
    s2 = jnp.sum(w2, axis=0, keepdims=True)       # (1,H)  colsum(w2)
    c2 = jnp.sum(t2, axis=0, keepdims=True)       # (1,H)  colsum(t2)
    r2 = jnp.sum(t2, axis=1, keepdims=True)       # (H,1)  rowsum(t2)

    t3_b = jnp.sum(t3, axis=0)                    # (H,H)  sum over batch
    g3 = jnp.sum(t3_b, axis=0, keepdims=True)     # (1,H)  g3[m] = sum_{b,i} t3[b,i,m]
    r3 = jnp.sum(t3_b, axis=1, keepdims=True)     # (H,1)  r3[j] = sum_{b,k} t3[b,j,k]
    c3 = jnp.sum(t3, axis=1)                      # (B,H)  c3[b,m] = sum_i t3[b,i,m]

    # ---- only remaining matmul: the bmm(x, y) term -------------------------
    # sum(bmm(x, y)) = sum_b colsum(x[b]) . rowsum(y[b])
    #   colsum(x[b]) = c3[b] @ w1.T            -> A  (B,H)
    #   rowsum(y[b]) = t3[b] @ colsum(w2)      -> R  (B,H)
    A = lax.dot_general(c3, w1, (((1,), (1,)), ((), ())),
                        preferred_element_type=f32)           # (B,H)
    R = jnp.sum(t3 * s2.reshape(1, 1, -1), axis=2)            # (B,H)
    z1_sum = jnp.sum(A * R)

    # ---- scalar-sum identities:  sum(A@B) = colsum(A) . rowsum(B) ----------
    #   sum(x)+sum(y) = g3.(s1+s2)     sum(z2) = t1.t1
    #   sum(z3) = c2.r2                sum(z4) = t1.r2
    #   sum(z5) = t1.c2                sum(z6) = c2.r3
    #   sum(z7) = g3.r2
    row_terms = g3 * (s1 + s2) + t1 * (t1 + c2)               # (1,H): x,y,z2,z5
    mixed = (jnp.dot(c2 + t1 + g3, r2, preferred_element_type=f32)   # z3+z4+z7
             + jnp.dot(c2, r3, preferred_element_type=f32))          # z6

    total = jnp.sum(row_terms) + z1_sum + jnp.sum(mixed)
    out_ref[...] = jnp.zeros_like(out_ref) + total


def model_forward(t_1d, t_2d, t_3d, w1, w2):
    B, H, _ = t_3d.shape
    t1 = t_1d.reshape(1, H).astype(jnp.float32)

    vmem = pl.BlockSpec(memory_space=pltpu.MemorySpace.VMEM)
    out = pl.pallas_call(
        _model_kernel,
        out_shape=jax.ShapeDtypeStruct((1, 1), jnp.float32),
        in_specs=[vmem, vmem, vmem, vmem, vmem],
        out_specs=pl.BlockSpec(memory_space=pltpu.MemorySpace.VMEM),
    )(t1, t_2d, t_3d, w1, w2)
    return out[0, 0]


def _reference(t_1d, t_2d, t_3d, w1, w2):
    x = jnp.einsum("bij,kj->bik", t_3d, w1)
    y = jnp.einsum("bij,kj->bik", t_3d, w2)
    z1 = jnp.einsum("bij,bjk->bik", x, y)
    z2 = jnp.dot(t_1d, t_1d)
    z3 = t_2d @ t_2d
    z4 = t_1d @ t_2d
    z5 = t_2d @ t_1d
    z6 = jnp.einsum("ij,bjk->bik", t_2d, t_3d)
    z7 = jnp.einsum("bij,jk->bik", t_3d, t_2d)
    return (x.sum() + y.sum() + z1.sum() + z2.sum() + z3.sum()
            + z4.sum() + z5.sum() + z6.sum() + z7.sum())


if __name__ == "__main__":
    B, H = 2, 32
    key = jax.random.PRNGKey(0)
    k1, k2, k3, kw1, kw2 = jax.random.split(key, 5)

    t_1d = jax.random.normal(k1, (H,), dtype=jnp.float32) * 0.1
    t_2d = jax.random.normal(k2, (H, H), dtype=jnp.float32) * 0.1
    t_3d = jax.random.normal(k3, (B, H, H), dtype=jnp.float32) * 0.1
    # Deterministic "Linear" weights, (out_features, in_features) like torch.
    w1 = jax.random.normal(kw1, (H, H), dtype=jnp.float32) * 0.1
    w2 = jax.random.normal(kw2, (H, H), dtype=jnp.float32) * 0.1

    out = model_forward(t_1d, t_2d, t_3d, w1, w2)
    jax.block_until_ready(out)

    ref = _reference(t_1d, t_2d, t_3d, w1, w2)
    assert jnp.allclose(out, ref, rtol=1e-4, atol=1e-4), (out, ref)

    print("KERNEL_OK")
</pallas_src>

<mosaic_0001>
module attributes {stable_mosaic.version = 11 : i64} {
  func.func @_model_kernel(%arg0: memref<1x32xf32, #tpu.memory_space<vmem>>, %arg1: memref<32x32xf32, #tpu.memory_space<vmem>>, %arg2: memref<2x32x32xf32, #tpu.memory_space<vmem>>, %arg3: memref<32x32xf32, #tpu.memory_space<vmem>>, %arg4: memref<32x32xf32, #tpu.memory_space<vmem>>, %arg5: memref<1x1xf32, #tpu.memory_space<vmem>>) attributes {dimension_semantics = [], scalar_prefetch = 0 : i64, scratch_operands = 0 : i64, tpu.core_type = #tpu.core_type<tc>} {
    %c0 = arith.constant 0 : index
    %c0_0 = arith.constant 0 : index
    %0 = vector.load %arg0[%c0, %c0_0] : memref<1x32xf32, #tpu.memory_space<vmem>>, vector<1x32xf32>
    %c0_1 = arith.constant 0 : index
    %c0_2 = arith.constant 0 : index
    %1 = vector.load %arg1[%c0_1, %c0_2] : memref<32x32xf32, #tpu.memory_space<vmem>>, vector<32x32xf32>
    %c0_3 = arith.constant 0 : index
    %c0_4 = arith.constant 0 : index
    %c0_5 = arith.constant 0 : index
    %2 = vector.load %arg2[%c0_3, %c0_4, %c0_5] : memref<2x32x32xf32, #tpu.memory_space<vmem>>, vector<2x32x32xf32>
    %c0_6 = arith.constant 0 : index
    %c0_7 = arith.constant 0 : index
    %3 = vector.load %arg3[%c0_6, %c0_7] : memref<32x32xf32, #tpu.memory_space<vmem>>, vector<32x32xf32>
    %c0_8 = arith.constant 0 : index
    %c0_9 = arith.constant 0 : index
    %4 = vector.load %arg4[%c0_8, %c0_9] : memref<32x32xf32, #tpu.memory_space<vmem>>, vector<32x32xf32>
    %cst = arith.constant dense<0.000000e+00> : vector<32xf32>
    %5 = vector.multi_reduction <add>, %3, %cst [0] : vector<32x32xf32> to vector<32xf32>
    %6 = vector.shape_cast %5 : vector<32xf32> to vector<1x32xf32>
    %cst_10 = arith.constant dense<0.000000e+00> : vector<32xf32>
    %7 = vector.multi_reduction <add>, %4, %cst_10 [0] : vector<32x32xf32> to vector<32xf32>
    %8 = vector.shape_cast %7 : vector<32xf32> to vector<1x32xf32>
    %cst_11 = arith.constant dense<0.000000e+00> : vector<32xf32>
    %9 = vector.multi_reduction <add>, %1, %cst_11 [0] : vector<32x32xf32> to vector<32xf32>
    %10 = vector.shape_cast %9 : vector<32xf32> to vector<1x32xf32>
    %cst_12 = arith.constant dense<0.000000e+00> : vector<32xf32>
    %11 = vector.multi_reduction <add>, %1, %cst_12 [1] : vector<32x32xf32> to vector<32xf32>
    %12 = vector.shape_cast %11 : vector<32xf32> to vector<32x1xf32>
    %cst_13 = arith.constant dense<0.000000e+00> : vector<32x32xf32>
    %13 = vector.multi_reduction <add>, %2, %cst_13 [0] : vector<2x32x32xf32> to vector<32x32xf32>
    %cst_14 = arith.constant dense<0.000000e+00> : vector<32xf32>
    %14 = vector.multi_reduction <add>, %13, %cst_14 [0] : vector<32x32xf32> to vector<32xf32>
    %15 = vector.shape_cast %14 : vector<32xf32> to vector<1x32xf32>
    %cst_15 = arith.constant dense<0.000000e+00> : vector<32xf32>
    %16 = vector.multi_reduction <add>, %13, %cst_15 [1] : vector<32x32xf32> to vector<32xf32>
    %17 = vector.shape_cast %16 : vector<32xf32> to vector<32x1xf32>
    %cst_16 = arith.constant dense<0.000000e+00> : vector<2x32xf32>
    %18 = vector.multi_reduction <add>, %2, %cst_16 [1] : vector<2x32x32xf32> to vector<2x32xf32>
    %cst_17 = arith.constant dense<0.000000e+00> : vector<2x32xf32>
    %19 = tpu.matmul %18, %3, %cst_17 {dimension_numbers = #tpu.dot_dimension_numbers<[1], [1], [0], [0], [0, 0, 1, 0], [], []>} : vector<2x32xf32>, vector<32x32xf32>, vector<2x32xf32> -> vector<2x32xf32>
    %20 = vector.shape_cast %8 : vector<1x32xf32> to vector<1x1x32xf32>
    %21 = vector.broadcast %20 : vector<1x1x32xf32> to vector<2x32x32xf32>
    %22 = arith.mulf %2, %21 : vector<2x32x32xf32>
    %cst_18 = arith.constant dense<0.000000e+00> : vector<2x32xf32>
    %23 = vector.multi_reduction <add>, %22, %cst_18 [2] : vector<2x32x32xf32> to vector<2x32xf32>
    %24 = arith.mulf %19, %23 : vector<2x32xf32>
    %25 = vector.shape_cast %24 : vector<2x32xf32> to vector<1x2x32xf32>
    %cst_19 = arith.constant dense<0.000000e+00> : vector<1xf32>
    %26 = vector.multi_reduction <add>, %25, %cst_19 [1, 2] : vector<1x2x32xf32> to vector<1xf32>
    %27 = vector.shape_cast %26 : vector<1xf32> to vector<1x1x1xf32>
    %28 = vector.extract %27[0, 0, 0] : f32 from vector<1x1x1xf32>
    %29 = arith.addf %6, %8 : vector<1x32xf32>
    %30 = arith.mulf %15, %29 : vector<1x32xf32>
    %31 = arith.addf %0, %10 : vector<1x32xf32>
    %32 = arith.mulf %0, %31 : vector<1x32xf32>
    %33 = arith.addf %30, %32 : vector<1x32xf32>
    %34 = arith.addf %10, %0 : vector<1x32xf32>
    %35 = arith.addf %34, %15 : vector<1x32xf32>
    %cst_20 = arith.constant dense<0.000000e+00> : vector<1x1xf32>
    %36 = tpu.matmul %35, %12, %cst_20 {dimension_numbers = #tpu.dot_dimension_numbers<[1], [0], [0], [1], [0, 0, 1, 1], [], []>} : vector<1x32xf32>, vector<32x1xf32>, vector<1x1xf32> -> vector<1x1xf32>
    %cst_21 = arith.constant dense<0.000000e+00> : vector<1x1xf32>
    %37 = tpu.matmul %10, %17, %cst_21 {dimension_numbers = #tpu.dot_dimension_numbers<[1], [0], [0], [1], [0, 0, 1, 1], [], []>} : vector<1x32xf32>, vector<32x1xf32>, vector<1x1xf32> -> vector<1x1xf32>
    %38 = arith.addf %36, %37 : vector<1x1xf32>
    %39 = vector.shape_cast %33 : vector<1x32xf32> to vector<1x1x32xf32>
    %cst_22 = arith.constant dense<0.000000e+00> : vector<1xf32>
    %40 = vector.multi_reduction <add>, %39, %cst_22 [1, 2] : vector<1x1x32xf32> to vector<1xf32>
    %41 = vector.shape_cast %40 : vector<1xf32> to vector<1x1x1xf32>
    %42 = vector.extract %41[0, 0, 0] : f32 from vector<1x1x1xf32>
    %43 = arith.addf %42, %28 : f32
    %44 = vector.shape_cast %38 : vector<1x1xf32> to vector<1x1x1xf32>
    %cst_23 = arith.constant dense<0.000000e+00> : vector<1xf32>
    %45 = vector.multi_reduction <add>, %44, %cst_23 [1, 2] : vector<1x1x1xf32> to vector<1xf32>
    %46 = vector.shape_cast %45 : vector<1xf32> to vector<1x1x1xf32>
    %47 = vector.extract %46[0, 0, 0] : f32 from vector<1x1x1xf32>
    %48 = arith.addf %43, %47 : f32
    %cst_24 = arith.constant 0.000000e+00 : f32
    %49 = vector.broadcast %cst_24 : f32 to vector<1x1xf32>
    %50 = vector.broadcast %48 : f32 to vector<1x1xf32>
    %51 = arith.addf %49, %50 : vector<1x1xf32>
    %c0_25 = arith.constant 0 : index
    %c0_26 = arith.constant 0 : index
    %52 = vector.load %arg5[%c0_25, %c0_26] : memref<1x1xf32, #tpu.memory_space<vmem>>, vector<1x1xf32>
    tpu.vector_store %arg5[%c0_25, %c0_26], %51 {strides = array<i32>} : memref<1x1xf32, #tpu.memory_space<vmem>>, vector<1x1xf32>,
    return
  }
}

</mosaic_0001>

<bundles_post_ra>
// kernel: tpu_custom_call.1
= control target key start
LH: loop header
LB: loop body
LE: loop exit
PB: predicated region body
PF: predicated region fallthrough
CT: control target
= control target key end

     0   :  { %10 = vsyncpa [#allocation3], 0  ;;  %s955_s0 = inlined_call_operand.hbm [shape: f32[1,32], index: 0, kind: input, shape index: {}]   ;;  %s956_s1 = inlined_call_operand.hbm [shape: f32[32,32], index: 1, kind: input, shape index: {}]   ;;  %s957_s2 = inlined_call_operand.hbm [shape: f32[2,32,32], index: 2, kind: input, shape index: {}]   ;;  %s958_s3 = inlined_call_operand.hbm [shape: f32[32,32], index: 3, kind: input, shape index: {}]   ;;  %s959_s4 = inlined_call_operand.hbm [shape: f32[32,32], index: 4, kind: input, shape index: {}]   ;;  %s960_s5 = inlined_call_operand.hbm [shape: f32[1,1], index: 5, kind: output, shape index: {}]  }
   0x1   :  { %11 = vsyncpa [#allocation6], 0 }
   0x2   :  { %12 = vsyncpa [#allocation9], 0 }
   0x3   :  { %13 = vsyncpa [#allocation4], 0  ;;  %s782_s18 = smov [#allocation5]  }
   0x4   :  { %s29_s19 = sshll.u32 %s782_s18, 4  ;;  %s30_s19 = int_to_ptr.vmem [resolvable:$true] %s29_s19 }
   0x5   :  { %s662_s20 = scalar_lea.vmem %s30_s19, 512  ;;  %p667_p1 = scmp.lt.s32.totalorder %s30_s19, %s30_s19 }
   0x6   :  { %p663_p0 = scmp.ne.s32.totalorder %s30_s19, %s662_s20  ;;  %p668_p2 = scmp.lt.s32.totalorder %s662_s20, %s662_s20 }
   0x8   :  { %p669_p3 = por %p668_p2, %p667_p1 }
   0xa   :  { %p670_p4 = pnand %p669_p3, %p663_p0 }
   0xc   :  { %673 = shalt.err (!%p670_p4)
}
   0xd   :  { %s783_s21 = smov 128   ;;  %s784_s22 = smov 8  }
   0xe   :  { %35 = dma.hbm_to_vmem [thread:$0]  %s956_s1, 512, %s30_s19, [#allocation6], %s783_s21, %s783_s21, %s784_s22  }
   0xf   :  { %s785_s25 = smov [#allocation8]   ;;  %s786_s27 = smov [#allocation2]  }
  0x10   :  { %s53_s26 = sshll.u32 %s785_s25, 4  ;;  %s20_s28 = sshll.u32 %s786_s27, 4  ;;  %s54_s26 = int_to_ptr.vmem [resolvable:$true] %s53_s26  ;;  %s21_s28 = int_to_ptr.vmem [resolvable:$true] %s20_s28 }
  0x11   :  { %s682_s29 = scalar_lea.vmem %s54_s26, 512  ;;  %p687_p6 = scmp.lt.s32.totalorder %s54_s26, %s54_s26 }
  0x12   :  { %p683_p5 = scmp.ne.s32.totalorder %s54_s26, %s682_s29  ;;  %p688_p7 = scmp.lt.s32.totalorder %s682_s29, %s682_s29 }
  0x14   :  { %p689_p8 = por %p688_p7, %p687_p6 }
  0x16   :  { %p690_p9 = pnand %p689_p8, %p683_p5 }
  0x18   :  { %693 = shalt.err (!%p690_p9)
}
  0x19   :  { %59 = dma.hbm_to_vmem [thread:$0]  %s958_s3, 512, %s54_s26, [#allocation9], %s783_s21, %s783_s21, %s784_s22  }
  0x1a   :  { %s702_s1 = scalar_lea.vmem %s21_s28, 16  ;;  %s706_s7 = scalar_lea.vmem %s21_s28, 32 }
  0x1b   :  { %p703_p10 = scmp.ne.s32.totalorder %s21_s28, %s702_s1  ;;  %p707_p11 = scmp.lt.s32.totalorder %s21_s28, %s21_s28 }
  0x1c   :  { %p708_p12 = scmp.lt.s32.totalorder %s706_s7, %s702_s1 }
  0x1e   :  { %p709_p13 = por %p708_p12, %p707_p11 }
  0x20   :  { %p710_p0 = pnand %p709_p13, %p703_p10 }
  0x22   :  { %713 = shalt.err (!%p710_p0)
}
  0x23   :  { %23 = dma.hbm_to_vmem [thread:$0]  %s955_s0, 16, %s21_s28, [#allocation3]  }
  0x24   :  { %s787_s10 = smov [#allocation7]   ;;  %s788_s12 = smov [#allocation10]  }
  0x25   :  { %s41_s11 = sshll.u32 %s787_s10, 4  ;;  %s65_s13 = sshll.u32 %s788_s12, 4  ;;  %s42_s11 = int_to_ptr.vmem [resolvable:$true] %s41_s11  ;;  %s66_s13 = int_to_ptr.vmem [resolvable:$true] %s65_s13 }
  0x26   :  { %s722_s14 = scalar_lea.vmem %s42_s11, 1024  ;;  %p727_p2 = scmp.lt.s32.totalorder %s42_s11, %s42_s11 }
  0x27   :  { %p723_p1 = scmp.ne.s32.totalorder %s42_s11, %s722_s14  ;;  %p728_p3 = scmp.lt.s32.totalorder %s722_s14, %s722_s14 }
  0x29   :  { %p729_p4 = por %p728_p3, %p727_p2 }
  0x2b   :  { %p730_p5 = pnand %p729_p4, %p723_p1 }
  0x2d   :  { %733 = shalt.err (!%p730_p5)
}
  0x2e   :  { %47 = dma.hbm_to_vmem [thread:$0]  %s957_s2, 1024, %s42_s11, [#allocation6], %s783_s21, %s783_s21, %s784_s22  }
  0x2f   :  { %s742_s0 = scalar_lea.vmem %s66_s13, 512  ;;  %p747_p7 = scmp.lt.s32.totalorder %s66_s13, %s66_s13 }
  0x30   :  { %p743_p6 = scmp.ne.s32.totalorder %s66_s13, %s742_s0  ;;  %p748_p8 = scmp.lt.s32.totalorder %s742_s0, %s742_s0 }
  0x32   :  { %p749_p9 = por %p748_p8, %p747_p7 }
  0x34   :  { %p750_p10 = pnand %p749_p9, %p743_p6 }
  0x36   :  { %753 = shalt.err (!%p750_p10)
}
  0x37   :  { %71 = dma.hbm_to_vmem [thread:$0]  %s959_s4, 512, %s66_s13, [#allocation9], %s783_s21, %s783_s21, %s784_s22  }
  0x38   :  { %774 = dma.done.wait [#allocation3], 16  }
  0x39   :  { %775 = vsyncadd [#allocation3], 4294967280 }
  0x3a   :  { %776 = dma.done.wait [#allocation6], 1536  }
  0x3b   :  { %777 = vsyncadd [#allocation6], 4294965760 }
  0x3c   :  { %778 = dma.done.wait [#allocation9], 1024  }
  0x3d   :  { %779 = vsyncadd [#allocation9], 4294966272  ;;  %v789_v0 = vmov 0.0   ;;  %vm790_vm0 = vmmov 0   ;;  %v855_v1 = vld [vmem:[#allocation8 + $0x18] sm:$0xff]  ;;  %vm108_vm1 = vcmask 261120  }
  0x3e   :  { %605 = vmatprep.subr.mxu0 %v789_v0  ;;  %613 = vmatprep.mubr.msk.f32.mxu0 %vm790_vm0, %v789_v0  ;;  %v857_v2 = vld [vmem:[#allocation7 + $0x18] sm:$0xff]  ;;  %v861_v3 = vld [vmem:[#allocation8 + $0x10] sm:$0xff]  ;;  %v876_v10 = vld [vmem:[#allocation7 + $0x8] sm:$0xff]  ;;  %vm209_vm2 = vcmask 1041409   ;;  %vm547_vm3 = vcmask 253952   ;;  %vm346_vm4 = vcmask 130112  }
  0x3f   :  { %616 = vmatprep.subr.mxu1 %v789_v0  ;;  %624 = vmatprep.mubr.msk.f32.mxu1 %vm790_vm0, %v789_v0  ;;  %v863_v4 = vld [vmem:[#allocation7 + $0x38] sm:$0xff]  ;;  %v865_v5 = vld [vmem:[#allocation7 + $0x10] sm:$0xff]  ;;  %v165_v6 = vsel %vm108_vm1, %v857_v2, 0.0  ;;  %v878_v11 = vld [vmem:[#allocation7 + $0x28] sm:$0xff]  ;;  %v159_v14 = vsel %vm108_vm1, %v876_v10, 0.0  ;;  %vm353_vm5 = vcmask 195712  }
  0x40   :  { %606 = vmatpush3.xpose.msk.msra.mxu0 %vm108_vm1, %v855_v1  ;;  %v166_v7 = vsel %vm108_vm1, %v863_v4, 0.0  ;;  %v872_v8 = vld [vmem:[#allocation7 + $0x30] sm:$0xff]  ;;  %v162_v9 = vsel %vm108_vm1, %v865_v5, 0.0  ;;  %v160_v15 = vsel %vm108_vm1, %v878_v11, 0.0  ;;  %v886_v16 = vld [vmem:[#allocation7] sm:$0xff]  ;;  %v89_v24 = vld [vmem:[#allocation5 + $0x8] sm:$0xff] }
  0x41   :  { %607 = vmatprep.subr.mxu0 %v789_v0  ;;  %v167_v12 = vadd.f32 %v166_v7, %v165_v6  ;;  %v163_v13 = vsel %vm108_vm1, %v872_v8, 0.0  ;;  %v888_v17 = vld [vmem:[#allocation7 + $0x20] sm:$0xff]  ;;  %v161_v19 = vadd.f32 %v160_v15, %v159_v14  ;;  %v156_v20 = vsel %vm108_vm1, %v886_v16, 0.0  ;;  %v898_v26 = vld [vmem:[#allocation8 + $0x8] sm:$0xff]  ;;  %v91_v30 = vld [vmem:[#allocation5 + $0x18] sm:$0xff]  ;;  %s791_s19 = smov [#allocation11]  }
  0x42   :  { %v164_v18 = vadd.f32 %v163_v13, %v162_v9  ;;  %v157_v22 = vsel %vm108_vm1, %v888_v17, 0.0  ;;  %v189_v23 = vadd.f32 %v159_v14, %v156_v20  ;;  %v88_v25 = vld [vmem:[#allocation5] sm:$0xff]  ;;  %v90_v33 = vld [vmem:[#allocation5 + $0x10] sm:$0xff]  ;;  %v105_v35 = vld [vmem:[#allocation10 + $0x8] sm:$0xff]  ;;  %v136_v38 = vsel %vm108_vm1, %v89_v24, 0.0  ;;  %s572_s20 = sshll.u32 %s791_s19, 4  ;;  %s573_s20 = int_to_ptr.vmem [resolvable:$true] %s572_s20 }
  0x43   :  { %v173_v21 = vsel %vm108_vm1, %v167_v12, 0.0  ;;  %v169_v27 = vsel %vm108_vm1, %v161_v19, 0.0  ;;  %v158_v28 = vadd.f32 %v157_v22, %v156_v20  ;;  %v198_v29 = vadd.f32 %v160_v15, %v157_v22  ;;  %v104_v34 = vld [vmem:[#allocation10] sm:$0xff]  ;;  %v106_v40 = vld [vmem:[#allocation10 + $0x10] sm:$0xff]  ;;  %v107_v48 = vld [vmem:[#allocation10 + $0x18] sm:$0xff]  ;;  %s754_s23 = scalar_lea.vmem %s573_s20, 16  ;;  %p759_p12 = scmp.lt.s32.totalorder %s573_s20, %s573_s20 }
  0x44   :  { %608 = vmatpush3.xpose.msk.msra.mxu0 %vm108_vm1, %v861_v3  ;;  %187 = vadd.xlane.f32.xlu0 %v173_v21  ;;  %v171_v31 = vsel %vm108_vm1, %v164_v18, 0.0  ;;  %v190_v32 = vadd.f32 %v189_v23, %v162_v9  ;;  %v135_v39 = vsel %vm108_vm1, %v88_v25, 0.0  ;;  %v140_v43 = vsel %vm108_vm1, %v91_v30, 0.0  ;;  %v100_v45 = vld [vmem:[#allocation8] sm:$0xff]  ;;  %p755_p11 = scmp.ne.s32.totalorder %s573_s20, %s754_s23  ;;  %s758_s24 = scalar_lea.vmem %s573_s20, 32 }
  0x45   :  { %609 = vmatprep.subr.mxu0 %v789_v0  ;;  %183 = vadd.xlane.f32.xlu1 %v169_v27  ;;  %v168_v36 = vsel %vm108_vm1, %v158_v28, 0.0  ;;  %v199_v37 = vadd.f32 %v198_v29, %v163_v13  ;;  %v137_v44 = vadd.f32 %v136_v38, %v135_v39  ;;  %v138_v47 = vsel %vm108_vm1, %v90_v33, 0.0  ;;  %p760_p13 = scmp.lt.s32.totalorder %s758_s24, %s754_s23 }
  0x46   :  { %v191_v41 = vadd.f32 %v190_v32, %v165_v6  ;;  %v170_v42 = vadd.f32 %v169_v27, %v168_v36  ;;  %v122_v49 = vsel %vm108_vm1, %v104_v34, 0.0  ;;  %v123_v50 = vsel %vm108_vm1, %v105_v35, 0.0 }
  0x47   :  { %v200_v46 = vadd.f32 %v199_v37, %v166_v7  ;;  %v139_v53 = vadd.f32 %v138_v47, %v137_v44  ;;  %v125_v54 = vsel %vm108_vm1, %v106_v40, 0.0  ;;  %v124_v56 = vadd.f32 %v123_v50, %v122_v49  ;;  %p761_p0 = por %p760_p13, %p759_p12 }
  0x48   :  { %610 = vmatpush3.xpose.msk.msra.mxu0 %vm108_vm1, %v898_v26  ;;  %185 = vadd.xlane.f32.xlu0 %v171_v31  ;;  %v192_v51 = vrot.slane %v191_v41, 4  ;;  %v172_v52 = vadd.f32 %v171_v31, %v170_v42  ;;  %v127_v60 = vsel %vm108_vm1, %v107_v48, 0.0  ;;  %v109_v42 = vsel %vm108_vm1, %v100_v45, 0.0 }
  0x49   :  { %611 = vmatprep.subr.mxu0 %v789_v0  ;;  %181 = vadd.xlane.f32.xlu1 %v168_v36  ;;  %v201_v55 = vrot.slane %v200_v46, 4  ;;  %v141_v59 = vadd.f32 %v140_v43, %v139_v53  ;;  %v126_v62 = vadd.f32 %v125_v54, %v124_v56  ;;  %vm360_vm6 = vcmask 261312   ;;  %p762_p1 = pnand %p761_p0, %p755_p11 }
  0x4a   :  { %v193_v57 = vadd.f32 %v192_v51, %v191_v41  ;;  %v174_v58 = vadd.f32 %v173_v21, %v172_v52  ;;  %v110_v41 = vsel %vm108_vm1, %v898_v26, 0.0  ;;  %vm384_vm7 = vcmask 254976  }
  0x4b   :  { %v202_v61 = vadd.f32 %v201_v55, %v200_v46  ;;  %v142_v7 = vrot.slane %v141_v59, 4  ;;  %v128_v12 = vadd.f32 %v127_v60, %v126_v62  ;;  %v111_v49 = vadd.f32 %v110_v41, %v109_v42 }
  0x4c   :  { %612 = vmatpush3.xpose.msk.msra.mxu0 %vm108_vm1, %v100_v45  ;;  %154 = vadd.xlane.f32.xlu0 %v140_v43  ;;  %v175_v63 = vrot.slane %v174_v58, 4  ;;  %v194_v6 = vrot.slane %v193_v57, 2  ;;  %v87_v43 = vld [vmem:[#allocation2] sm:$0x1]  ;;  %v112_v45 = vsel %vm108_vm1, %v861_v3, 0.0  ;;  %vm564_vm8 = vcmask 0  }
  0x4d   :  { %152 = vadd.xlane.f32.xlu1 %v138_v47  ;;  %v203_v9 = vrot.slane %v202_v61, 2  ;;  %v143_v15 = vadd.f32 %v142_v7, %v141_v59  ;;  %v129_v19 = vrot.slane %v128_v12, 4  ;;  %v113_v54 = vadd.f32 %v112_v45, %v111_v49 }
  0x4e   :  { %v176_v13 = vadd.f32 %v175_v63, %v174_v58  ;;  %v195_v14 = vadd.f32 %v194_v6, %v193_v57 }
  0x4f   :  { %v204_v18 = vadd.f32 %v203_v9, %v202_v61  ;;  %v130_v23 = vadd.f32 %v129_v19, %v128_v12  ;;  %v144_v25 = vrot.slane %v143_v15, 2 }
  0x50   :  { %150 = vadd.xlane.f32.xlu0 %v136_v38  ;;  %v196_v20 = vrot.slane %v195_v14, 1  ;;  %v177_v21 = vrot.slane %v176_v13, 2 }
  0x51   :  { %148 = vadd.xlane.f32.xlu1 %v135_v39  ;;  %v205_v22 = vrot.slane %v204_v18, 1  ;;  %v131_v28 = vrot.slane %v130_v23, 2  ;;  %v145_v32 = vadd.f32 %v144_v25, %v143_v15 }
  0x52   :  { %v197_v24 = vadd.f32 %v196_v20, %v195_v14  ;;  %v178_v29 = vadd.f32 %v177_v21, %v176_v13  ;;  %v335_v20 = vlaneseq }
  0x53   :  { %v206_v27 = vadd.f32 %v205_v22, %v204_v18  ;;  %v132_v31 = vadd.f32 %v131_v28, %v130_v23  ;;  %v146_v36 = vrot.slane %v145_v32, 1 }
  0x54   :  { %v179_v34 = vrot.slane %v178_v29, 1  ;;  %v336_v23 = vand.u32 127, %v335_v20 }
  0x55   :  { %v210_v30 = vsel %vm209_vm2, %v206_v27, %v197_v24  ;;  %v133_v33 = vrot.slane %v132_v31, 1  ;;  %v147_v48 = vadd.f32 %v146_v36, %v145_v32  ;;  %v338_v27 = vshrl.u32 %v335_v20, 7 }
  0x56   :  { %614 = vmatmul.mubr.msk.f32.vlgmr.msra.gmra.mxu0 %vm108_vm1, %v210_v30  ;;  %v180_v44 = vadd.f32 %v179_v34, %v178_v29  ;;  %v341_v28 = vadd.s32 4294967288, %v336_v23  ;;  %v348_v29 = vadd.s32 4294967280, %v336_v23  ;;  %v355_v34 = vadd.s32 4294967272, %v336_v23 }
  0x57   :  { %v134_v35 = vadd.f32 %v133_v33, %v132_v31  ;;  %v397_v26 = vadd.f32 %v147_v48, %v87_v43  ;;  %v339_v30 = vsub.s32 %v336_v23, %v338_v27 }
  0x58   :  { %v344_v31 = vsub.s32 %v341_v28, %v338_v27 }
  0x59   :  { %v295_v37 = vmul.f32 %v134_v35, %v886_v16  ;;  %v296_v38 = vmul.f32 %v134_v35, %v876_v10  ;;  %v299_v39 = vmul.f32 %v134_v35, %v888_v17  ;;  %v300_v40 = vmul.f32 %v134_v35, %v878_v11 }
  0x5a   :  { %v297_v10 = vmul.f32 %v134_v35, %v865_v5  ;;  %v301_v17 = vmul.f32 %v134_v35, %v872_v8  ;;  %v400_v50 = vadd.f32 %v397_v26, %v180_v44  ;;  %v298_v5 = vmul.f32 %v134_v35, %v857_v2 }
  0x5b   :  { %v303_v46 = vsel %vm108_vm1, %v295_v37, 0.0  ;;  %v306_v47 = vsel %vm108_vm1, %v296_v38, 0.0  ;;  %v315_v16 = vsel %vm108_vm1, %v299_v39, 0.0  ;;  %v318_v11 = vsel %vm108_vm1, %v300_v40, 0.0 }
  0x5c   :  { %304 = vadd.xlane.f32.xlu0 %v303_v46  ;;  %307 = vadd.xlane.f32.xlu1 %v306_v47  ;;  %v309_v51 = vsel %vm108_vm1, %v297_v10, 0.0  ;;  %v321_v52 = vsel %vm108_vm1, %v301_v17, 0.0  ;;  %v302_v53 = vmul.f32 %v134_v35, %v863_v4  ;;  %v114_v8 = vsel %vm108_vm1, %v855_v1, 0.0 }
  0x5d   :  { %v312_v55 = vsel %vm108_vm1, %v298_v5, 0.0  ;;  %v115_v56 = vadd.f32 %v114_v8, %v113_v54  ;;  %v398_v62 = vmul.f32 %v397_v26, %v87_v43  ;;  %v358_v39 = vsub.s32 %v355_v34, %v338_v27 }
  0x5e   :  { %v324_v3 = vsel %vm108_vm1, %v302_v53, 0.0 }
  0x5f   :  { %v116_v57 = vrot.slane %v115_v56, 4 }
  0x60   :  { %316 = vadd.xlane.f32.xlu0 %v315_v16  ;;  %319 = vadd.xlane.f32.xlu1 %v318_v11 }
  0x61   :  { %v117_v58 = vadd.f32 %v116_v57, %v115_v56 }
  0x63   :  { %v118_v59 = vrot.slane %v117_v58, 2 }
  0x64   :  { %310 = vadd.xlane.f32.xlu0 %v309_v51  ;;  %322 = vadd.xlane.f32.xlu1 %v321_v52 }
  0x65   :  { %v119_v60 = vadd.f32 %v118_v59, %v117_v58 }
  0x67   :  { %v120_v2 = vrot.slane %v119_v60, 1 }
  0x68   :  { %313 = vadd.xlane.f32.xlu0 %v312_v55  ;;  %325 = vadd.xlane.f32.xlu1 %v324_v3 }
  0x69   :  { %v121_v61 = vadd.f32 %v120_v2, %v119_v60 }
  0x6b   :  { %v395_v4 = vadd.f32 %v134_v35, %v121_v61  ;;  %v351_v35 = vsub.s32 %v348_v29, %v338_v27 }
  0x6d   :  { %v396_v63 = vmul.f32 %v395_v4, %v180_v44 }
  0x6f   :  { %v399_v1 = vadd.f32 %v398_v62, %v396_v63 }
  0x71   :  { %v548_v6 = vsel %vm547_vm3, %v399_v1, 0.0 }
  0x72   :  { %549 = vadd.xlane.f32.xlu1 %v548_v6 }
  0xcd   :  { %v188_v7 = vpop.xlane.xlu0 %187 }
  0xce   :  { %617 = vmatpush3.msra.mxu1 %v188_v7  ;;  %v184_v9 = vpop.xlane.xlu1 %183 }
  0xcf   :  { %618 = vmatprep.subr.mxu1 %v789_v0 }
  0xd1   :  { %v186_v12 = vpop.xlane.xlu0 %185 }
  0xd2   :  { %619 = vmatpush3.msra.mxu1 %v186_v12  ;;  %v182_v13 = vpop.xlane.xlu1 %181 }
  0xd3   :  { %620 = vmatprep.subr.mxu1 %v789_v0 }
  0xd4   :  { %621 = vmatpush3.msra.mxu1 %v184_v9 }
  0xd5   :  { %622 = vmatprep.subr.mxu1 %v789_v0  ;;  %v155_v14 = vpop.xlane.xlu0 %154 }
  0xd6   :  { %623 = vmatpush3.msra.mxu1 %v182_v13  ;;  %v153_v15 = vpop.xlane.xlu1 %152 }
  0xd7   :  { %627 = vmatprep.subr.mxu1 %v789_v0  ;;  %625 = vmatmul.mubr.msk.f32.vlgmr.msra.gmra.mxu1 %vm108_vm1, %v147_v48 }
  0xd8   :  { %628 = vmatpush3.msra.mxu1 %v155_v14  ;;  %635 = vmatprep.mubr.msk.f32.mxu1 %vm790_vm0, %v789_v0 }
  0xd9   :  { %629 = vmatprep.subr.mxu1 %v789_v0  ;;  %v151_v18 = vpop.xlane.xlu0 %150 }
  0xda   :  { %630 = vmatpush3.msra.mxu1 %v153_v15  ;;  %v149_v19 = vpop.xlane.xlu1 %148 }
  0xdb   :  { %631 = vmatprep.subr.mxu1 %v789_v0 }
  0xdc   :  { %632 = vmatpush3.msra.mxu1 %v151_v18 }
  0xdd   :  { %633 = vmatprep.subr.mxu1 %v789_v0 }
  0xde   :  { %634 = vmatpush3.msra.mxu1 %v149_v19 }
  0xdf   :  { %636 = vmatmul.mubr.msk.f32.vlgmr.msra.gmra.mxu1 %vm108_vm1, %v400_v50 }
  0xe5   :  { %v305_v21 = vpop.xlane.xlu0 %304  ;;  %v308_v22 = vpop.xlane.xlu1 %307 }
  0xe6   :  { %v340_v36 = vrot.slane %v305_v21, %v339_v30  ;;  %v345_v0 = vrot.slane %v308_v22, %v344_v31 }
  0xe8   :  { %v347_v44 = vsel %vm346_vm4, %v345_v0, %v340_v36 }
  0xe9   :  { %v317_v24 = vpop.xlane.xlu0 %316  ;;  %v320_v25 = vpop.xlane.xlu1 %319 }
  0xea   :  { %v365_v37 = vrot.slane %v317_v24, %v339_v30  ;;  %v369_v38 = vrot.slane %v320_v25, %v344_v31 }
  0xec   :  { %v370_v46 = vsel %vm346_vm4, %v369_v38, %v365_v37 }
  0xed   :  { %v311_v32 = vpop.xlane.xlu0 %310  ;;  %v323_v33 = vpop.xlane.xlu1 %322 }
  0xee   :  { %v352_v40 = vrot.slane %v311_v32, %v351_v35  ;;  %v374_v41 = vrot.slane %v323_v33, %v351_v35 }
  0xf0   :  { %v354_v10 = vsel %vm353_vm5, %v352_v40, %v347_v44  ;;  %v375_v16 = vsel %vm353_vm5, %v374_v41, %v370_v46 }
  0xf1   :  { %v314_v42 = vpop.xlane.xlu0 %313  ;;  %v326_v43 = vpop.xlane.xlu1 %325 }
  0xf2   :  { %v359_v47 = vrot.slane %v314_v42, %v358_v39  ;;  %v379_v48 = vrot.slane %v326_v43, %v358_v39 }
  0xf4   :  { %v361_v11 = vsel %vm360_vm6, %v359_v47, %v354_v10  ;;  %v380_v17 = vsel %vm360_vm6, %v379_v48, %v375_v16 }
  0xf5   :  { %v381_v49 = vsel %vm209_vm2, %v380_v17, %v361_v11 }
  0xfb   :  { %v550_v5 = vpop.xlane.xlu1 %549 }
  0xfc   :  { %v551_v54 = vrot.slane %v550_v5, 4 }
  0xfe   :  { %v552_v55 = vadd.f32 %v551_v54, %v550_v5 }
 0x100   :  { %v553_v56 = vrot.slane %v552_v55, 2 }
 0x102   :  { %v554_v60 = vadd.f32 %v553_v56, %v552_v55 }
 0x104   :  { %v555_v4 = vrot.slane %v554_v60, 1 }
 0x106   :  { %v556_v1 = vadd.f32 %v555_v4, %v554_v60 }
 0x116   :  { %v291_v26 = vpop.f32.mrf.mxu0 }
 0x117   :  { %v383_v45 = vmul.f32 %v381_v49, %v291_v26 }
 0x118   :  { %v615_v50 = vpop.f32.mrf.mxu0 }
 0x119   :  { %v385_v51 = vsel %vm384_vm7, %v383_v45, 0.0 }
 0x11a   :  { %386 = vadd.xlane.f32.xlu0 %v385_v51 }
 0x197   :  { %v470_v52 = vpop.f32.mrf.mxu1 }
 0x199   :  { %v626_v53 = vpop.f32.mrf.mxu1 }
 0x19f   :  { %v543_v8 = vpop.f32.mrf.mxu1 }
 0x1a0   :  { %v544_v6 = vadd.f32 %v543_v8, %v470_v52 }
 0x1a1   :  { %v637_v3 = vpop.f32.mrf.mxu1 }
 0x1a3   :  { %v387_v57 = vpop.xlane.xlu0 %386 }
 0x1a4   :  { %v388_v58 = vrot.slane %v387_v57, 4 }
 0x1a6   :  { %v389_v59 = vadd.f32 %v388_v58, %v387_v57 }
 0x1a8   :  { %v390_v2 = vrot.slane %v389_v59, 2 }
 0x1aa   :  { %v391_v61 = vadd.f32 %v390_v2, %v389_v59 }
 0x1ac   :  { %v392_v62 = vrot.slane %v391_v61, 1 }
 0x1ae   :  { %v393_v63 = vadd.f32 %v392_v62, %v391_v61 }
 0x1b0   :  { %638 = vpush %v393_v63 }
 0x1b1   :  { %640 = vpush %v556_v1 }
 0x1b2   :  { %642 = vpush %v544_v6 }
 0x1e1   :  { %s639_s2 = spop %638 }
 0x1e2   :  { %s641_s4 = spop %640 }
 0x1e3   :  { %s558_s18 = sadd.f32 %s641_s4, %s639_s2  ;;  %s643_s21 = spop %642 }
 0x1e5   :  { %s561_s22 = sadd.f32 %s643_s21, %s558_s18 }
 0x1e7   :  { %v562_v7 = vstv %s561_s22 }
 0x1e8   :  { %565 = vst.msk [vmem:[#allocation11] sm:$0x1] %vm564_vm8, %v562_v7 }
 0x1e9   :  { %765 = shalt.err (!%p762_p1)
}
 0x1ea   :  { %575 = dma.vmem_to_hbm [thread:$0]  %s573_s20, 16, %s960_s5, [#allocation4]  }
 0x1eb   :  { %780 = dma.done.wait [#allocation4], 16  }
 0x1ec   :  { %781 = vsyncadd [#allocation4], 4294967280 }
 0x1ed   :  { %579 = vsyncpa [#allocation3], 1 }
 0x1ee   :  { %580 = vsyncpa [#allocation6], 1 }
 0x1ef   :  { %581 = vsyncpa [#allocation9], 1 }
 0x1f0   :  { %582 = vsyncpa [#allocation4], 1 }

</bundles_post_ra>
